<compile_context>
chip_gen: v7x
topology: tpu7x:2x2x1
jax: 0.10.0
libtpu: 0.0.40
codegen_flags: <defaults>
</compile_context>

<pallas_src>
import jax
import jax.numpy as jnp
from jax.experimental import pallas as pl
from jax.experimental.pallas import tpu as pltpu


def classifier_kernel(x_ref, w_ref, b_ref, o_ref):
    # x_ref: (tr, 256) f32 VMEM — 128 samples per row, features interleaved in lanes.
    # w_ref: (256, 128) f32 VMEM — w_big[2k+f, k] = W[f]; one MXU dot de-interleaves
    #        and applies Linear(2, 1) simultaneously.
    # b_ref: (1,)  f32 SMEM — bias scalar.
    # o_ref: (tr, 128) f32 VMEM — lane/sublane-dense outputs, sample order preserved.
    y = jnp.dot(x_ref[...], w_ref[...],
                preferred_element_type=jnp.float32,
                precision=jax.lax.Precision.HIGHEST)   # full-f32 MXU passes
    o_ref[...] = jax.nn.sigmoid(y + b_ref[0]).astype(o_ref.dtype)


def _pick_rows_per_step(R: int) -> int:
    # 1 row = 128 samples; VMEM cost ~3 KiB/row with double buffering.
    MAX_ROWS = 4096        # 512K samples/step, ~12.3 MiB DB'd -> fits v5e's 16 MiB scoped default
    MIN_SPLIT_ROWS = 1024  # only split into >=4 steps once each step stays >= 128K samples
    if R < 8:
        return R                               # full second-to-last dim (legal)
    if R >= 4 * MIN_SPLIT_ROWS:
        tr = min(MAX_ROWS, pl.cdiv(R, 4))      # >=4 steps -> 2 tiles per v7x TensorCore
    else:
        tr = min(MAX_ROWS, R)                  # fewest steps that fit VMEM
    return max(8, (tr // 8) * 8)               # sublane multiple


def classifier_nn(x, weight, bias, *, block_rows=None, min_pallas_batch=4096):
    """sigmoid(x @ W^T + b) for nn.Linear(2, 1).

    x: (B, 2) float, weight: (1, 2), bias: (1,).  Returns (B, 1).
    """
    B, F = x.shape
    assert F == 2 and weight.shape == (1, 2) and bias.shape == (1,)

    # TODO(synk): min_pallas_batch crossover vs plain XLA is a heuristic — benchmark per gen.
    if B < min_pallas_batch:
        return jax.nn.sigmoid(
            x.astype(jnp.float32) @ weight.astype(jnp.float32).T
            + bias.astype(jnp.float32)).astype(x.dtype)

    xf = x.astype(jnp.float32).reshape(-1)     # (2B,) free view of row-major (B, 2)
    b_pad = 128 * pl.cdiv(B, 128)
    if b_pad != B:
        # Only non-multiple-of-128 batches pay this copy; aligned batches are
        # pad-free / transpose-free / slice-free end to end.
        xf = jnp.pad(xf, (0, 2 * (b_pad - B)))
    R = b_pad // 128
    x_rows = xf.reshape(R, 256)                # free reshape (contiguous)

    if block_rows is None:
        tr = _pick_rows_per_step(R)
    else:
        tr = R if R < 8 else max(8, (min(int(block_rows), R) // 8) * 8)
    grid = (pl.cdiv(R, tr),)                   # Pallas clips the ragged final block

    wv = weight.astype(jnp.float32).reshape(2)
    eye = jnp.eye(128, dtype=jnp.float32)
    w_big = (eye[:, None, :] * wv[None, :, None]).reshape(256, 128)   # 128 KiB, built once
    b_arr = bias.astype(jnp.float32).reshape(1)

    out = pl.pallas_call(
        classifier_kernel,
        out_shape=jax.ShapeDtypeStruct((R, 128), jnp.float32),
        grid=grid,
        in_specs=[
            pl.BlockSpec((tr, 256), lambda i: (i, 0)),            # batch tile
            pl.BlockSpec((256, 128), lambda i: (0, 0)),           # grid-constant weights
            pl.BlockSpec(memory_space=pltpu.MemorySpace.SMEM),    # bias scalar
        ],
        out_specs=pl.BlockSpec((tr, 128), lambda i: (i, 0)),      # lane+sublane dense
        compiler_params=pltpu.CompilerParams(
            dimension_semantics=("parallel",)),
    )(x_rows, w_big, b_arr)

    y = out.reshape(-1)
    if b_pad != B:
        y = y[:B]
    return y.reshape(B, 1).astype(x.dtype)


def reference(x, weight, bias):
    # Elementwise f32 reference (avoids XLA's default reduced-precision matmul).
    z = x[:, 0:1] * weight[0, 0] + x[:, 1:2] * weight[0, 1] + bias[0]
    return jax.nn.sigmoid(z)


if __name__ == "__main__":
    key = jax.random.PRNGKey(0)
    kx1, kx2, kx3, kw, kb = jax.random.split(key, 5)

    # Deterministic nn.Linear(2, 1)-style parameters.
    weight = jax.random.uniform(kw, (1, 2), dtype=jnp.float32, minval=-0.5, maxval=0.5)
    bias = jax.random.uniform(kb, (1,), dtype=jnp.float32, minval=-0.5, maxval=0.5)

    # 1) Aligned batch, forced small tile -> grid of 4 "parallel" steps (no pad/transpose).
    B1 = 4096
    x1 = jax.random.normal(kx1, (B1, 2), dtype=jnp.float32)
    out1 = jax.block_until_ready(classifier_nn(x1, weight, bias, block_rows=8))
    assert out1.shape == (B1, 1)
    assert jnp.allclose(out1, reference(x1, weight, bias), atol=1e-5, rtol=1e-5)

    # 2) Aligned batch whose row count (10) is not a multiple of the tile (8):
    #    exercises the Pallas ragged final block (masked writeback), still no pad.
    B2 = 1280
    x2 = jax.random.normal(kx2, (B2, 2), dtype=jnp.float32)
    out2 = jax.block_until_ready(
        classifier_nn(x2, weight, bias, block_rows=8, min_pallas_batch=128))
    assert out2.shape == (B2, 1)
    assert jnp.allclose(out2, reference(x2, weight, bias), atol=1e-5, rtol=1e-5)

    # 3) Unaligned batch -> minimal pad path (the only path that pays an extra copy).
    B3 = 200
    x3 = jax.random.normal(kx3, (B3, 2), dtype=jnp.float32)
    out3 = jax.block_until_ready(classifier_nn(x3, weight, bias, min_pallas_batch=128))
    assert out3.shape == (B3, 1)
    assert jnp.allclose(out3, reference(x3, weight, bias), atol=1e-5, rtol=1e-5)

    # 4) Tiny batch -> plain XLA fallback.
    B4 = 8
    x4 = x1[:B4]
    out4 = jax.block_until_ready(classifier_nn(x4, weight, bias))
    assert jnp.allclose(out4, reference(x4, weight, bias), atol=1e-5, rtol=1e-5)

    print("KERNEL_OK")
</pallas_src>

<mosaic_0001>
module attributes {stable_mosaic.version = 11 : i64} {
  func.func @classifier_kernel(%arg0: i32, %arg1: memref<8x256xf32, #tpu.memory_space<vmem>>, %arg2: memref<256x128xf32, #tpu.memory_space<vmem>>, %arg3: memref<1xf32, #tpu.memory_space<smem>>, %arg4: memref<8x128xf32, #tpu.memory_space<vmem>>) attributes {dimension_semantics = [#tpu.dimension_semantics<parallel>], iteration_bounds = array<i64: 4>, scalar_prefetch = 0 : i64, scratch_operands = 0 : i64, tpu.core_type = #tpu.core_type<tc>, window_params = [{transform_indices = @transform_0, window_bounds = array<i64: 8, 256>}, {pipeline_mode = #tpu.pipeline_mode<synchronous>, transform_indices = @transform_1, window_bounds = array<i64: 256, 128>}, {transform_indices = @transform_2, window_bounds = array<i64: 1>}, {transform_indices = @transform_3, window_bounds = array<i64: 8, 128>}]} {
    %c0 = arith.constant 0 : index
    %c0_0 = arith.constant 0 : index
    %0 = vector.load %arg1[%c0, %c0_0] : memref<8x256xf32, #tpu.memory_space<vmem>>, vector<8x256xf32>
    %c0_1 = arith.constant 0 : index
    %c0_2 = arith.constant 0 : index
    %1 = vector.load %arg2[%c0_1, %c0_2] : memref<256x128xf32, #tpu.memory_space<vmem>>, vector<256x128xf32>
    %cst = arith.constant dense<0.000000e+00> : vector<8x128xf32>
    %2 = tpu.matmul %0, %1, %cst {dimension_numbers = #tpu.dot_dimension_numbers<[1], [0], [0], [1], [0, 0, 1, 1], [], []>, precision = #tpu.contract_precision<fp32>} : vector<8x256xf32>, vector<256x128xf32>, vector<8x128xf32> -> vector<8x128xf32>
    %c0_3 = arith.constant 0 : index
    %3 = memref.load %arg3[%c0_3] : memref<1xf32, #tpu.memory_space<smem>>
    %4 = vector.broadcast %3 : f32 to vector<8x128xf32>
    %5 = arith.addf %2, %4 : vector<8x128xf32>
    %6 = arith.negf %5 : vector<8x128xf32>
    %7 = math.exp %6 : vector<8x128xf32>
    %cst_4 = arith.constant 1.000000e+00 : f32
    %8 = vector.broadcast %cst_4 : f32 to vector<8x128xf32>
    %9 = arith.addf %8, %7 : vector<8x128xf32>
    %10 = arith.divf %8, %9 : vector<8x128xf32>
    %c0_5 = arith.constant 0 : index
    %c0_6 = arith.constant 0 : index
    %11 = vector.load %arg4[%c0_5, %c0_6] : memref<8x128xf32, #tpu.memory_space<vmem>>, vector<8x128xf32>
    tpu.vector_store %arg4[%c0_5, %c0_6], %10 {strides = array<i32>} : memref<8x128xf32, #tpu.memory_space<vmem>>, vector<8x128xf32>,
    return
  }
  func.func @transform_0(%arg0: i32) -> (i32, i32) {
    %c0_i32 = arith.constant 0 : i32
    %c0_i32_0 = arith.constant 0 : i32
    return %arg0, %c0_i32 : i32, i32
  }
  func.func @transform_1(%arg0: i32) -> (i32, i32) {
    %c0_i32 = arith.constant 0 : i32
    %c0_i32_0 = arith.constant 0 : i32
    %c0_i32_1 = arith.constant 0 : i32
    return %c0_i32, %c0_i32_0 : i32, i32
  }
  func.func @transform_2(%arg0: i32) -> i32 {
    %c0_i32 = arith.constant 0 : i32
    %c0_i32_0 = arith.constant 0 : i32
    return %c0_i32 : i32
  }
  func.func @transform_3(%arg0: i32) -> (i32, i32) {
    %c0_i32 = arith.constant 0 : i32
    %c0_i32_0 = arith.constant 0 : i32
    return %arg0, %c0_i32 : i32, i32
  }
}

</mosaic_0001>

<bundles_post_ra>
// kernel: tpu_custom_call.1
= control target key start
LH: loop header
LB: loop body
LE: loop exit
PB: predicated region body
PF: predicated region fallthrough
CT: control target
= control target key end

     0   :  { %s2432_s0 = inlined_call_operand.hbm [shape: f32[32,256], index: 0, kind: input, shape index: {}]   ;;  %s2433_s1 = inlined_call_operand.hbm [shape: f32[256,128], index: 1, kind: input, shape index: {}]   ;;  %s2434_s2 = inlined_call_operand.<no memory space> [shape: f32[1], index: 2, kind: input, shape index: {}]   ;;  %s2435_s3 = inlined_call_operand.hbm [shape: f32[32,128], index: 3, kind: output, shape index: {}]  }
   0x1   :  { %8 = sst [smem:[#allocation2]] %s2434_s2 }
   0x2   :  { %9 = vsyncpa [#allocation4], 0 }
   0x3   :  { %11 = vsyncpa [#allocation4 + $0x1], 0 }
   0x4   :  { %12 = vsyncpa [#allocation7], 0 }
   0x5   :  { %13 = vsyncpa [#allocation5], 0 }
   0x6   :  { %15 = vsyncpa [#allocation5 + $0x1], 0  ;;  %s1842_s14 = smov 0   ;;  %s1844_s15 = smov 0  }
   0x7   :  { %s1846_s16 = smov 0   ;;  %s1848_s17 = smov 0  }
   0x8 LB: > { %s1863_s2 = sadd.s32 4294967295, %s1812_s17   ;;  %s1202_s18 = sadd.s32 4294967294, %s1812_s17   ;;  %s1812_s17 = sphi %s1848_s17, %s2544_s17   ;;  %s1808_s16 = sphi %s1846_s16, %s2543_s16   ;;  %s1804_s15 = sphi %s1844_s15, %s2542_s15   ;;  %s1800_s14 = sphi %s1842_s14, %s2541_s14  }
   0x9   : > { %p41_p0 = scmp.ne.s32.totalorder %s1804_s15, %s1800_s14  ;;  %p2436_p1 = scmp.eq.s32.totalorder %s1863_s2, 0 }
   0xa   : > { %p113_p3 = scmp.eq.s32.totalorder %s1202_s18, 3  ;;  %p1203_p5 = scmp.ge.s32.totalorder %s1812_s17, 1 }
   0xb   : > { %p1872_p4 = por %p2436_p1, %p41_p0  ;;  %p120_p7 = scmp.lt.s32.totalorder %s1812_s17, 5 }
   0xc   : > { %p1877_p6 = por %p113_p3, %p41_p0  ;;  %s1814_s22 = smov [#allocation6]  }
   0xd   : > { %s2484_s19 = scalar_select %p1872_p4, 1, 0 }
   0xe   : > { %s2485_s20 = scalar_select %p1877_p6, 1, 0 }
   0xf   : > { %p1882_p8 = pnand %p1203_p5, %p120_p7  ;;  %s132_s23 = sshll.u32 %s1814_s22, 4  ;;  %s133_s23 = int_to_ptr.vmem [resolvable:$true] %s132_s23 }
  0x10   : > { %s1895_s25 = sadd.s32 1, %s1812_s17   ;;  %s28_s26 = sadd.s32 1, %s1808_s16 }
  0x11   : > { %s2486_s21 = scalar_select %p1882_p8, 1, 0 }
  0x12   : > { %p1629_p9 = pneg %p1882_p8  ;;  %s25_s27 = ssub.s32 %s1812_s17, %s1895_s25 }
  0x13   : > { %s1684_s30 = scalar_lea.hbm %s2433_s1, 4096 }
  0x14   : > { %p1890_p10 = pnand %p1629_p9, %p2436_p1  ;;  %p1685_p11 = scmp.ne.s32.totalorder %s2433_s1, %s1684_s30 }
  0x15   : > { %p1691_p3 = scmp.lt.u32.totalorder %s1684_s30, %s2433_s1 }
  0x16   : > { %p1686_p12 = pneg %p1890_p10 }
  0x18   : > { %p1687_p13 = pnand %p1686_p12, %p1685_p11 }
  0x1a   : > { %p1688_p0 = pneg %p1687_p13 }
  0x1c   : > { %p1693_p5 = pnand %p1691_p3, %p1688_p0 }
  0x1e   : > { %1696 = shalt.err (!%p1693_p5)
}
  0x1f   : > { %s1697_s8 = scalar_lea.vmem %s133_s23, 4096  ;;  %p1705_p2 = scmp.lt.s32.totalorder %s133_s23, %s133_s23 }
  0x20   : > { %p1698_p7 = scmp.ne.s32.totalorder %s133_s23, %s1697_s8  ;;  %p1706_p6 = scmp.lt.s32.totalorder %s1697_s8, %s1697_s8 }
  0x22   : > { %p1700_p9 = pnand %p1698_p7, %p1686_p12  ;;  %p1707_p4 = por %p1706_p6, %p1705_p2 }
  0x24   : > { %p1701_p1 = pneg %p1700_p9 }
  0x26   : > { %p1708_p8 = pnand %p1707_p4, %p1701_p1 }
  0x28   : > { %1711 = shalt.err (!%p1708_p8)
}
  0x29   : > { %s1815_s9 = smov 128   ;;  %s1816_s10 = smov 8  }
  0x2a   : > { %1632 = dma.hbm_to_vmem [thread:$0]  (!%p1890_p10), %s2433_s1, 4096, %s133_s23, [#allocation7], %s1815_s9, %s1815_s9, %s1816_s10  }
  0x2b   : > { %p26_p11 = scmp.eq.s32.totalorder %s25_s27, 0  ;;  %p35_p2 = scmp.ne.s32.totalorder %s1808_s16, %s1804_s15 }
  0x2c   : > { %p36_p1 = scmp.eq.s32.totalorder %s1812_s17, 0  ;;  %p1642_p4 = scmp.lt.s32.totalorder %s1812_s17, 4 }
  0x2d   : > { %s1921_s13 = scalar_select %p26_p11, %s1808_s16, %s28_s26  }
  0x2e   : > { %p37_p6 = por %p36_p1, %p35_p2  ;;  %p2488_p8 = scmp.eq.s32.totalorder %s1863_s2, 3 }
  0x2f   : > { %s149_s22 = sand.u32 1, %s1808_s16   ;;  %s1218_s28 = sshll.u32 %s1812_s17, 8 }
  0x30   : > { %p1925_p12 = por %p2488_p8, %p35_p2  ;;  %s1206_s29 = sshll.u32 %s149_s22, 4 }
  0x31   : > { %s1934_s4 = scalar_lea.hbm %s2432_s0, %s1218_s28  ;;  %s153_s23 = scalar_lea.vmem [#allocation3], %s1206_s29 }
  0x32   : > { %s161_s26 = sshll.u32 %s153_s23, 4  ;;  %p1936_p10 = pnand %p1642_p4, %p37_p6  ;;  %s1940_s26 = int_to_ptr.vmem [resolvable:$true] %s161_s26 }
  0x33   : > { %s150_s5 = scalar_lea.sflag [#allocation4], %s149_s22  ;;  %s1712_s6 = scalar_lea.hbm %s1934_s4, 256 }
  0x34   : > { %p1713_p13 = scmp.ne.s32.totalorder %s1934_s4, %s1712_s6  ;;  %p1714_p0 = pneg %p1936_p10 }
  0x35   : > { %s1717_s9 = scalar_lea.hbm %s2432_s0, 1024  ;;  %p1718_p7 = scmp.lt.u32.totalorder %s1934_s4, %s2432_s0 }
  0x36   : > { %p1715_p3 = pnand %p1714_p0, %p1713_p13  ;;  %p1719_p9 = scmp.lt.u32.totalorder %s1717_s9, %s1712_s6 }
  0x37   : > { %p1721_p2 = scmp.lt.u32.totalorder %s1712_s6, %s1934_s4 }
  0x38   : > { %p1716_p5 = pneg %p1715_p3  ;;  %p1720_p11 = por %p1719_p9, %p1718_p7 }
  0x3a   : > { %p1722_p1 = por %p1721_p2, %p1720_p11 }
  0x3c   : > { %p1723_p4 = pnand %p1722_p1, %p1716_p5 }
  0x3e   : > { %1726 = shalt.err (!%p1723_p4)
}
  0x3f   : > { %s1727_s12 = scalar_lea.vmem %s1940_s26, 256  ;;  %s1817_s22 = smov [#allocation3]  }
  0x40   : > { %p1728_p6 = scmp.ne.s32.totalorder %s1940_s26, %s1727_s12  ;;  %s1732_s28 = sshll.u32 %s1817_s22, 4  ;;  %s1733_s28 = int_to_ptr.vmem [resolvable:$false] %s1732_s28 }
  0x41   : > { %s1734_s29 = scalar_lea.vmem %s1733_s28, 512  ;;  %p1735_p3 = scmp.lt.s32.totalorder %s1940_s26, %s1733_s28 }
  0x42   : > { %p1730_p8 = pnand %p1728_p6, %p1714_p0  ;;  %p1736_p7 = scmp.lt.s32.totalorder %s1734_s29, %s1727_s12 }
  0x44   : > { %p1731_p13 = pneg %p1730_p8  ;;  %p1737_p9 = por %p1736_p7, %p1735_p3 }
  0x46   : > { %p1738_p11 = pnand %p1737_p9, %p1731_p13 }
  0x48   : > { %1741 = shalt.err (!%p1738_p11)
}
  0x49   : > { %1636 = dma.hbm_to_vmem [thread:$0]  (!%p1936_p10), %s1934_s4, 256, %s1940_s26, %s150_s5  }
  0x4a   : > { %p2491_p5 = scmp.ne.s32.totalorder %s2486_s21, 0 }
  0x4c   : > { %170 = sbr.rel (%p2491_p5) target bundleno = 472 (0x1d8), region = 32 }
  0x53   : > { %s1970_s24 = sand.u32 1, %s1804_s15   ;;  %p2492_p0 = scmp.ne.s32.totalorder %s2484_s19, 0 }
  0x54   : > { %s1210_s30 = sshll.u32 %s1970_s24, 4  ;;  %s173_s23 = scalar_lea.sflag [#allocation4], %s1970_s24 }
  0x55   : > { %s1974_s6 = scalar_lea.vmem [#allocation3], %s1210_s30 }
  0x56   : > { %1787 = dma.done.wait (%p2492_p0), %s173_s23, 256  }
  0x57   : > { %1789 = vsyncadd (%p2492_p0), %s173_s23, 4294967040  ;;  %p2493_p10 = scmp.eq.s32.totalorder %s1863_s2, 0 }
  0x59   : > { %1791 = dma.done.wait (%p2493_p10), [#allocation7], 4096   ;;  %p2494_p2 = pmov %p2493_p10 }
  0x5a   : > { %v221_v0 = vld [vmem:[#allocation6 + $0x80] sm:$0xff]  ;;  %v222_v1 = vld [vmem:[#allocation6 + $0x88] sm:$0xff]  ;;  %v223_v7 = vld [vmem:[#allocation6 + $0x90] sm:$0xff]  ;;  %s237_s19 = sld [smem:[#allocation2]]  ;;  %s1212_s21 = sshll.u32 %s1970_s24, 3 }
  0x5b   : > { %1793 = vsyncadd (%p2494_p2), [#allocation7], 4294963200  ;;  %v205_v2 = vld [vmem:[#allocation6] sm:$0xff]  ;;  %v288_v3 = vand.u32 4294901760, %v221_v0  ;;  %v291_v4 = vand.u32 4294901760, %v222_v1  ;;  %v206_v5 = vld [vmem:[#allocation6 + $0x8] sm:$0xff] }
  0x5c   : > { %v240_v6 = vand.u32 4294901760, %v205_v2  ;;  %v224_v8 = vld [vmem:[#allocation6 + $0x98] sm:$0xff]  ;;  %v243_v9 = vand.u32 4294901760, %v206_v5  ;;  %v294_v10 = vand.u32 4294901760, %v223_v7  ;;  %v207_v12 = vld [vmem:[#allocation6 + $0x10] sm:$0xff]  ;;  %v225_v18 = vld [vmem:[#allocation6 + $0xa0] sm:$0xff] }
  0x5d   : > { %v297_v11 = vand.u32 4294901760, %v224_v8  ;;  %v208_v13 = vld [vmem:[#allocation6 + $0x18] sm:$0xff]  ;;  %v1984_v14 = vpack.c.bf16 %v291_v4, %v288_v3  ;;  %v246_v16 = vand.u32 4294901760, %v207_v12  ;;  %v226_v19 = vld [vmem:[#allocation6 + $0xa8] sm:$0xff]  ;;  %v209_v23 = vld [vmem:[#allocation6 + $0x20] sm:$0xff]  ;;  %v300_v29 = vand.u32 4294901760, %v225_v18 }
  0x5e   : > { %v1986_v15 = vsub.f32 %v205_v2, %v240_v6  ;;  %v249_v17 = vand.u32 4294901760, %v208_v13  ;;  %v1988_v20 = vpack.c.bf16 %v243_v9, %v240_v6  ;;  %v1990_v21 = vsub.f32 %v206_v5, %v243_v9  ;;  %v210_v24 = vld [vmem:[#allocation6 + $0x28] sm:$0xff]  ;;  %v227_v37 = vld [vmem:[#allocation6 + $0xb0] sm:$0xff]  ;;  %v228_v42 = vld [vmem:[#allocation6 + $0xb8] sm:$0xff]  ;;  %s1215_s4 = sshll.u32 %s1863_s2, 7  ;;  %s202_s26 = scalar_lea.vmem [#allocation8], %s1212_s21 }
  0x5f   : > { %v1992_v22 = vpack.c.bf16 %v297_v11, %v294_v10  ;;  %1430 = vmatprep.subr.bf16.mxu0 %v1984_v14  ;;  %v1995_v25 = vsub.f32 %v223_v7, %v294_v10  ;;  %v1997_v26 = vsub.f32 %v224_v8, %v297_v11  ;;  %v2001_v28 = vsub.f32 %v207_v12, %v246_v16  ;;  %v211_v55 = vld [vmem:[#allocation6 + $0x30] sm:$0xff]  ;;  %v212_v56 = vld [vmem:[#allocation6 + $0x38] sm:$0xff]  ;;  %v229_v5 = vld [vmem:[#allocation6 + $0xc0] sm:$0xff]  ;;  %s1122_s27 = sshll.u32 %s202_s26, 4  ;;  %s2389_s8 = scalar_lea.hbm %s2435_s3, %s1215_s4  ;;  %s2391_s27 = int_to_ptr.vmem [resolvable:$true] %s1122_s27 }
  0x60   : > { %v1999_v27 = vpack.c.bf16 %v249_v17, %v246_v16  ;;  %1432 = vmatpush3.bf16.msra.mxu0 %v1988_v20  ;;  %v303_v30 = vand.u32 4294901760, %v226_v19  ;;  %v2004_v31 = vsub.f32 %v221_v0, %v288_v3  ;;  %v2006_v32 = vsub.f32 %v222_v1, %v291_v4  ;;  %v230_v6 = vld [vmem:[#allocation6 + $0xc8] sm:$0xff]  ;;  %v213_v11 = vld [vmem:[#allocation6 + $0x40] sm:$0xff]  ;;  %s1109_s9 = scalar_lea.sflag [#allocation5], %s1970_s24  ;;  %s1742_s10 = scalar_lea.vmem %s2391_s27, 128 }
  0x61   : > { %1434 = vmatprep.subr.bf16.mxu0 %v1992_v22  ;;  %v252_v33 = vand.u32 4294901760, %v209_v23  ;;  %v255_v34 = vand.u32 4294901760, %v210_v24  ;;  %v2455_v35 = vand.u32 4294901760, %v1986_v15  ;;  %v2453_v36 = vand.u32 4294901760, %v1990_v21  ;;  %p1743_p1 = scmp.ne.s32.totalorder %s2391_s27, %s1742_s10  ;;  %s1818_s2 = smov [#allocation8]  }
  0x62   : > { %v2011_v38 = vsub.f32 %v208_v13, %v249_v17  ;;  %v2013_v39 = vpack.c.bf16 %v303_v30, %v300_v29  ;;  %v2015_v40 = vsub.f32 %v225_v18, %v300_v29  ;;  %v2458_v41 = vand.u32 4294901760, %v2004_v31  ;;  %v214_v29 = vld [vmem:[#allocation6 + $0x48] sm:$0xff]  ;;  %s1746_s11 = sshll.u32 %s1818_s2, 4  ;;  %s1747_s11 = int_to_ptr.vmem [resolvable:$false] %s1746_s11 }
  0x63   : > { %v2018_v43 = vsub.f32 %v226_v19, %v303_v30  ;;  %v2457_v44 = vand.u32 4294901760, %v2006_v32  ;;  %v2021_v45 = vpack.c.bf16 %v255_v34, %v252_v33  ;;  %v2023_v46 = vsub.f32 %v209_v23, %v252_v33  ;;  %p1744_p4 = pnand %p1743_p1, %p1925_p12  ;;  %s1748_s12 = scalar_lea.vmem %s1747_s11, 256 }
  0x64   : > { %1436 = vmatpush3.bf16.msra.mxu0 %v1999_v27  ;;  %v467_v47 = vsub.f32 %v2004_v31, %v2458_v41  ;;  %v355_v48 = vsub.f32 %v1986_v15, %v2455_v35  ;;  %v362_v49 = vsub.f32 %v1990_v21, %v2453_v36  ;;  %v306_v50 = vand.u32 4294901760, %v227_v37  ;;  %v204_v41 = vld [vmem:[%s1974_s6 + $0x8] sm:$0xff]  ;;  %p1749_p8 = scmp.lt.s32.totalorder %s2391_s27, %s1747_s11  ;;  %p1750_p13 = scmp.lt.s32.totalorder %s1748_s12, %s1742_s10 }
  0x65   : > { %1438 = vmatprep.subr.bf16.mxu0 %v2013_v39  ;;  %v474_v51 = vsub.f32 %v2006_v32, %v2457_v44  ;;  %v309_v52 = vand.u32 4294901760, %v228_v42  ;;  %v2451_v53 = vand.u32 4294901760, %v1995_v25  ;;  %v2449_v54 = vand.u32 4294901760, %v1997_v26  ;;  %p1745_p6 = pneg %p1744_p4 }
  0x66   : > { %v468_v57 = vand.u32 4294901760, %v467_v47  ;;  %v2041_v58 = vsub.f32 %v210_v24, %v255_v34  ;;  %v356_v59 = vand.u32 4294901760, %v355_v48  ;;  %v363_v60 = vand.u32 4294901760, %v362_v49  ;;  %p1751_p3 = por %p1750_p13, %p1749_p8 }
  0x67   : > { %v475_v61 = vand.u32 4294901760, %v474_v51  ;;  %v2043_v62 = vpack.c.bf16 %v309_v52, %v306_v50  ;;  %v2045_v63 = vsub.f32 %v227_v37, %v306_v50  ;;  %v481_v0 = vsub.f32 %v1995_v25, %v2451_v53 }
  0x68   : > { %1440 = vmatpush3.bf16.msra.mxu0 %v2021_v45  ;;  %v1463_v1 = vpack.c.bf16 %v363_v60, %v356_v59  ;;  %v488_v2 = vsub.f32 %v1997_v26, %v2449_v54  ;;  %v258_v3 = vand.u32 4294901760, %v211_v55  ;;  %v261_v4 = vand.u32 4294901760, %v212_v56  ;;  %v232_v59 = vld [vmem:[#allocation6 + $0xd8] sm:$0xff]  ;;  %p1752_p7 = pnand %p1751_p3, %p1745_p6 }
  0x69   : > { %v1461_v7 = vpack.c.bf16 %v475_v61, %v468_v57  ;;  %1442 = vmatprep.subr.bf16.mxu0 %v2043_v62  ;;  %v482_v8 = vand.u32 4294901760, %v481_v0  ;;  %v2448_v9 = vand.u32 4294901760, %v2001_v28  ;;  %v2446_v10 = vand.u32 4294901760, %v2011_v38  ;;  %v231_v57 = vld [vmem:[#allocation6 + $0xd0] sm:$0xff]  ;;  %v236_v54 = vld [vmem:[#allocation6 + $0xf8] sm:$0xff] }
  0x6a   : > { %v2057_v12 = vsub.f32 %v228_v42, %v309_v52  ;;  %v489_v13 = vand.u32 4294901760, %v488_v2  ;;  %v2059_v16 = vpack.c.bf16 %v261_v4, %v258_v3  ;;  %v2061_v17 = vsub.f32 %v211_v55, %v258_v3 }
  0x6b   : > { %1462 = vmatprep.subr.bf16.mxu1 %v1461_v7  ;;  %v369_v18 = vsub.f32 %v2001_v28, %v2448_v9  ;;  %v376_v19 = vsub.f32 %v2011_v38, %v2446_v10  ;;  %v312_v23 = vand.u32 4294901760, %v229_v5  ;;  %v315_v24 = vand.u32 4294901760, %v230_v6  ;;  %v235_v9 = vld [vmem:[#allocation6 + $0xf0] sm:$0xff] }
  0x6c   : > { %1464 = vmatpush3.bf16.msra.mxu1 %v1463_v1  ;;  %v1465_v30 = vpack.c.bf16 %v489_v13, %v482_v8  ;;  %1444 = vmatpush3.bf16.msra.mxu0 %v2059_v16  ;;  %v2444_v33 = vand.u32 4294901760, %v2015_v40  ;;  %v2443_v34 = vand.u32 4294901760, %v2018_v43  ;;  %v264_v37 = vand.u32 4294901760, %v213_v11  ;;  %v215_v1 = vld [vmem:[#allocation6 + $0x50] sm:$0xff] }
  0x6d   : > { %v2072_v42 = vsub.f32 %v212_v56, %v261_v4  ;;  %v370_v47 = vand.u32 4294901760, %v369_v18  ;;  %v377_v48 = vand.u32 4294901760, %v376_v19  ;;  %v2074_v49 = vpack.c.bf16 %v315_v24, %v312_v23  ;;  %v216_v18 = vld [vmem:[#allocation6 + $0x58] sm:$0xff] }
  0x6e   : > { %1466 = vmatprep.subr.bf16.mxu1 %v1465_v30  ;;  %v2076_v50 = vsub.f32 %v229_v5, %v312_v23  ;;  %v495_v51 = vsub.f32 %v2015_v40, %v2444_v33  ;;  %v502_v52 = vsub.f32 %v2018_v43, %v2443_v34  ;;  %v267_v55 = vand.u32 4294901760, %v214_v29 }
  0x6f   : > { %v1467_v56 = vpack.c.bf16 %v377_v48, %v370_v47  ;;  %1446 = vmatprep.subr.bf16.mxu0 %v2074_v49  ;;  %v2085_v60 = vsub.f32 %v230_v6, %v315_v24  ;;  %v2441_v61 = vand.u32 4294901760, %v2023_v46  ;;  %v2439_v0 = vand.u32 4294901760, %v2041_v58 }
  0x70   : > { %v496_v2 = vand.u32 4294901760, %v495_v51  ;;  %v503_v3 = vand.u32 4294901760, %v502_v52  ;;  %v2089_v4 = vpack.c.bf16 %v267_v55, %v264_v37  ;;  %v2091_v5 = vsub.f32 %v213_v11, %v264_v37 }
  0x71   : > { %1468 = vmatpush3.bf16.msra.mxu1 %v1467_v56  ;;  %v383_v7 = vsub.f32 %v2023_v46, %v2441_v61  ;;  %v390_v6 = vsub.f32 %v2041_v58, %v2439_v0  ;;  %v318_v8 = vand.u32 4294901760, %v231_v57  ;;  %v321_v13 = vand.u32 4294901760, %v232_v59  ;;  %v234_v0 = vld [vmem:[#allocation6 + $0xe8] sm:$0xff] }
  0x72   : > { %v1469_v19 = vpack.c.bf16 %v503_v3, %v496_v2  ;;  %1448 = vmatpush3.bf16.msra.mxu0 %v2089_v4  ;;  %v2440_v23 = vand.u32 4294901760, %v2045_v63  ;;  %v2442_v11 = vand.u32 4294901760, %v2057_v12  ;;  %v270_v24 = vand.u32 4294901760, %v215_v1  ;;  %v233_v3 = vld [vmem:[#allocation6 + $0xe0] sm:$0xff] }
  0x73   : > { %v2102_v30 = vsub.f32 %v214_v29, %v267_v55  ;;  %v384_v37 = vand.u32 4294901760, %v383_v7  ;;  %v391_v47 = vand.u32 4294901760, %v390_v6  ;;  %v2104_v48 = vpack.c.bf16 %v321_v13, %v318_v8  ;;  %v217_v6 = vld [vmem:[#allocation6 + $0x60] sm:$0xff] }
  0x74   : > { %1470 = vmatprep.subr.bf16.mxu1 %v1469_v19  ;;  %v2106_v51 = vsub.f32 %v231_v57, %v318_v8  ;;  %v509_v52 = vsub.f32 %v2045_v63, %v2440_v23  ;;  %v516_v56 = vsub.f32 %v2057_v12, %v2442_v11  ;;  %v273_v2 = vand.u32 4294901760, %v216_v18  ;;  %v218_v11 = vld [vmem:[#allocation6 + $0x68] sm:$0xff] }
  0x75   : > { %v1471_v29 = vpack.c.bf16 %v391_v47, %v384_v37  ;;  %1450 = vmatprep.subr.bf16.mxu0 %v2104_v48  ;;  %v2115_v55 = vsub.f32 %v232_v59, %v321_v13  ;;  %v2445_v7 = vand.u32 4294901760, %v2061_v17  ;;  %v2447_v57 = vand.u32 4294901760, %v2072_v42 }
  0x76   : > { %v510_v8 = vand.u32 4294901760, %v509_v52  ;;  %v517_v19 = vand.u32 4294901760, %v516_v56  ;;  %v2119_v23 = vpack.c.bf16 %v273_v2, %v270_v24  ;;  %v2121_v61 = vsub.f32 %v215_v1, %v270_v24 }
  0x77   : > { %1472 = vmatpush3.bf16.msra.mxu1 %v1471_v29  ;;  %v397_v37 = vsub.f32 %v2061_v17, %v2445_v7  ;;  %v404_v59 = vsub.f32 %v2072_v42, %v2447_v57  ;;  %v324_v13 = vand.u32 4294901760, %v233_v3  ;;  %v327_v47 = vand.u32 4294901760, %v234_v0 }
  0x78   : > { %2495 = vst [vmem:[#allocation12_spill] sm:$0xff] %v2119_v23  ;;  %v1473_v34 = vpack.c.bf16 %v517_v19, %v510_v8  ;;  %1452 = vmatpush3.bf16.msra.mxu0 %v2119_v23  ;;  %v2450_v52 = vand.u32 4294901760, %v2076_v50  ;;  %v2452_v1 = vand.u32 4294901760, %v2085_v60  ;;  %v276_v24 = vand.u32 4294901760, %v217_v6 }
  0x79   : > { %v2132_v56 = vsub.f32 %v216_v18, %v273_v2  ;;  %v398_v29 = vand.u32 4294901760, %v397_v37  ;;  %v405_v33 = vand.u32 4294901760, %v404_v59  ;;  %v2134_v7 = vpack.c.bf16 %v327_v47, %v324_v13  ;;  %v219_v37 = vld [vmem:[#allocation6 + $0x70] sm:$0xff] }
  0x7a   : > { %1474 = vmatprep.subr.bf16.mxu1 %v1473_v34  ;;  %v2136_v10 = vsub.f32 %v233_v3, %v324_v13  ;;  %v523_v8 = vsub.f32 %v2076_v50, %v2450_v52  ;;  %v530_v19 = vsub.f32 %v2085_v60, %v2452_v1  ;;  %v279_v57 = vand.u32 4294901760, %v218_v11  ;;  %v220_v1 = vld [vmem:[#allocation6 + $0x78] sm:$0xff] }
  0x7b   : > { %2496 = vst [vmem:[#allocation13_spill] sm:$0xff] %v2134_v7  ;;  %v1475_v18 = vpack.c.bf16 %v405_v33, %v398_v29  ;;  %1454 = vmatprep.subr.bf16.mxu0 %v2134_v7  ;;  %v2145_v2 = vsub.f32 %v234_v0, %v327_v47  ;;  %v2454_v34 = vand.u32 4294901760, %v2091_v5  ;;  %v2456_v3 = vand.u32 4294901760, %v2102_v30 }
  0x7c   : > { %v524_v59 = vand.u32 4294901760, %v523_v8  ;;  %v531_v13 = vand.u32 4294901760, %v530_v19  ;;  %v2149_v52 = vpack.c.bf16 %v279_v57, %v276_v24  ;;  %v2151_v53 = vsub.f32 %v217_v6, %v276_v24 }
  0x7d   : > { %1476 = vmatpush3.bf16.msra.mxu1 %v1475_v18  ;;  %v411_v33 = vsub.f32 %v2091_v5, %v2454_v34  ;;  %v418_v0 = vsub.f32 %v2102_v30, %v2456_v3  ;;  %v330_v47 = vand.u32 4294901760, %v235_v9  ;;  %v333_v29 = vand.u32 4294901760, %v236_v54 }
  0x7e   : > { %2497 = vst [vmem:[#allocation14_spill] sm:$0xff] %v2149_v52  ;;  %v1477_v36 = vpack.c.bf16 %v531_v13, %v524_v59  ;;  %1456 = vmatpush3.bf16.msra.mxu0 %v2149_v52  ;;  %v2461_v8 = vand.u32 4294901760, %v2106_v51  ;;  %v2462_v6 = vand.u32 4294901760, %v2115_v55  ;;  %v282_v24 = vand.u32 4294901760, %v219_v37 }
  0x7f   : > { %v2162_v19 = vsub.f32 %v218_v11, %v279_v57  ;;  %v412_v18 = vand.u32 4294901760, %v411_v33  ;;  %v419_v34 = vand.u32 4294901760, %v418_v0  ;;  %v2164_v35 = vpack.c.bf16 %v333_v29, %v330_v47 }
  0x80   : > { %1478 = vmatprep.subr.bf16.mxu1 %v1477_v36  ;;  %v2166_v3 = vsub.f32 %v235_v9, %v330_v47  ;;  %v537_v59 = vsub.f32 %v2106_v51, %v2461_v8  ;;  %v544_v13 = vsub.f32 %v2115_v55, %v2462_v6  ;;  %v285_v44 = vand.u32 4294901760, %v220_v1  ;;  %v203_v9 = vld [vmem:[%s1974_s6] sm:$0xff] }
  0x81   : > { %2498 = vst [vmem:[#allocation15_spill] sm:$0xff] %v2164_v35  ;;  %v1479_v52 = vpack.c.bf16 %v419_v34, %v412_v18  ;;  %1458 = vmatprep.subr.bf16.mxu0 %v2164_v35  ;;  %v2176_v11 = vsub.f32 %v236_v54, %v333_v29  ;;  %v2463_v57 = vand.u32 4294901760, %v2121_v61  ;;  %v2464_v36 = vand.u32 4294901760, %v2132_v56 }
  0x82   : > { %v538_v33 = vand.u32 4294901760, %v537_v59  ;;  %v545_v0 = vand.u32 4294901760, %v544_v13  ;;  %v2181_v47 = vpack.c.bf16 %v285_v44, %v282_v24  ;;  %v2183_v8 = vsub.f32 %v219_v37, %v282_v24 }
  0x83   : > { %1480 = vmatpush3.bf16.msra.mxu1 %v1479_v52  ;;  %v425_v34 = vsub.f32 %v2121_v61, %v2463_v57  ;;  %v432_v54 = vsub.f32 %v2132_v56, %v2464_v36  ;;  %v2191_v29 = vand.u32 4294901760, %v204_v41  ;;  %v2467_v18 = vand.u32 4294901760, %v2136_v10 }
  0x84   : > { %2499 = vst [vmem:[#allocation16_spill] sm:$0xff] %v2181_v47  ;;  %v1481_v6 = vpack.c.bf16 %v545_v0, %v538_v33  ;;  %1460 = vmatpush3.bf16.msra.mxu0 %v2181_v47  ;;  %v2473_v59 = vand.u32 4294901760, %v2145_v2  ;;  %v1493_v52 = vpack.c.bf16 %v2006_v32, %v2004_v31  ;;  %v2198_v37 = vand.u32 4294901760, %v203_v9 }
  0x85   : > { %2500 = vst [vmem:[#allocation17_spill] sm:$0xff] %v2191_v29  ;;  %v426_v24 = vand.u32 4294901760, %v425_v34  ;;  %v433_v13 = vand.u32 4294901760, %v432_v54  ;;  %v2201_v57 = vsub.f32 %v204_v41, %v2191_v29  ;;  %v551_v36 = vsub.f32 %v2136_v10, %v2467_v18  ;;  %576 = vmatprep.mubr.f32.mxu1 %v2191_v29 }
  0x86   : > { %1482 = vmatprep.subr.bf16.mxu1 %v1481_v6  ;;  %v558_v33 = vsub.f32 %v2145_v2, %v2473_v59  ;;  %1494 = vmatprep.subr.bf16.mxu0 %v1493_v52  ;;  %v2211_v0 = vsub.f32 %v203_v9, %v2198_v37  ;;  %v2472_v34 = vand.u32 4294901760, %v2151_v53  ;;  %v2474_v41 = vand.u32 4294901760, %v2162_v19 }
  0x87   : > { %v2215_v54 = vsub.f32 %v220_v1, %v285_v44  ;;  %v1483_v47 = vpack.c.bf16 %v433_v13, %v426_v24  ;;  %v2475_v18 = vand.u32 4294901760, %v2201_v57  ;;  %v552_v35 = vand.u32 4294901760, %v551_v36 }
  0x88   : > { %v559_v29 = vand.u32 4294901760, %v558_v33  ;;  %v343_v6 = vand.u32 4294901760, %v2211_v0  ;;  %v439_v52 = vsub.f32 %v2151_v53, %v2472_v34  ;;  %v446_v9 = vsub.f32 %v2162_v19, %v2474_v41 }
  0x89   : > { %1484 = vmatpush3.bf16.msra.mxu1 %v1483_v47  ;;  %v338_v44 = vsub.f32 %v2201_v57, %v2475_v18  ;;  %v1495_v1 = vpack.c.bf16 %v1990_v21, %v1986_v15  ;;  %v2480_v36 = vand.u32 4294901760, %v2166_v3  ;;  %v2483_v24 = vand.u32 4294901760, %v2176_v11 }
  0x8a   : > { %v1485_v13 = vpack.c.bf16 %v559_v29, %v552_v35  ;;  %v344_v33 = vsub.f32 %v2211_v0, %v343_v6  ;;  %v440_v34 = vand.u32 4294901760, %v439_v52  ;;  %v447_v59 = vand.u32 4294901760, %v446_v9 }
  0x8b   : > { %v339_v41 = vand.u32 4294901760, %v338_v44  ;;  %v565_v47 = vsub.f32 %v2166_v3, %v2480_v36  ;;  %v572_v18 = vsub.f32 %v2176_v11, %v2483_v24  ;;  %v2482_v7 = vand.u32 4294901760, %v2183_v8 }
  0x8c   : > { %1486 = vmatprep.subr.bf16.mxu1 %v1485_v13  ;;  %v345_v23 = vand.u32 4294901760, %v344_v33  ;;  %v1487_v35 = vpack.c.bf16 %v447_v59, %v440_v34  ;;  %v1497_v29 = vpack.c.bf16 %v1997_v26, %v1995_v25  ;;  %v2481_v52 = vand.u32 4294901760, %v2215_v54 }
  0x8d   : > { %340 = vmatprep.mubr.f32.mxu0 %v339_v41  ;;  %v566_v9 = vand.u32 4294901760, %v565_v47  ;;  %v573_v44 = vand.u32 4294901760, %v572_v18  ;;  %v453_v36 = vsub.f32 %v2183_v8, %v2482_v7  ;;  %v1499_v33 = vpack.c.bf16 %v2011_v38, %v2001_v28 }
  0x8e   : > { %346 = vmatmul.mubr.f32.vlgmr.msra.gmra.mrb[0].mxu0 %v345_v23  ;;  %1488 = vmatpush3.bf16.msra.mxu1 %v1487_v35  ;;  %v460_v13 = vsub.f32 %v2215_v54, %v2481_v52  ;;  %v1501_v41 = vpack.c.bf16 %v2018_v43, %v2015_v40  ;;  %v1503_v23 = vpack.c.bf16 %v2041_v58, %v2023_v46  ;;  %v2502_v35 = vand.u32 4294901760, %v2006_v32 }
  0x8f   : > { %1496 = vmatpush3.bf16.msra.mxu0 %v1495_v1  ;;  %v1489_v59 = vpack.c.bf16 %v573_v44, %v566_v9  ;;  %v454_v34 = vand.u32 4294901760, %v453_v36  ;;  %713 = vmatprep.mubr.f32.mxu0 %v2201_v57  ;;  %v1505_v47 = vpack.c.bf16 %v2057_v12, %v2045_v63  ;;  %v2501_v36 = vand.u32 4294901760, %v2004_v31 }
  0x90   : > { %1498 = vmatprep.subr.bf16.mxu0 %v1497_v29  ;;  %v461_v18 = vand.u32 4294901760, %v460_v13  ;;  %v2503_v44 = vand.u32 4294901760, %v1986_v15  ;;  %v2504_v29 = vand.u32 4294901760, %v1990_v21  ;;  %v2505_v52 = vand.u32 4294901760, %v1995_v25 }
  0x91   : > { %1490 = vmatprep.subr.bf16.mxu1 %v1489_v59  ;;  %v1557_v9 = vpack.c.bf16 %v2502_v35, %v2501_v36  ;;  %v2506_v59 = vand.u32 4294901760, %v1997_v26  ;;  %v2507_v24 = vand.u32 4294901760, %v2001_v28  ;;  %v2509_v31 = vand.u32 4294901760, %v2015_v40 }
  0x92   : > { %v1491_v1 = vpack.c.bf16 %v461_v18, %v454_v34  ;;  %v1559_v13 = vpack.c.bf16 %v2504_v29, %v2503_v44  ;;  %v2508_v34 = vand.u32 4294901760, %v2011_v38  ;;  %v2510_v32 = vand.u32 4294901760, %v2018_v43  ;;  %v2525_v29 = vld [vmem:[#allocation14_spill] sm:$0xff] }
  0x93   : > { %v1561_v7 = vpack.c.bf16 %v2506_v59, %v2505_v52  ;;  %1500 = vmatpush3.bf16.msra.mxu0 %v1499_v33  ;;  %v2511_v15 = vand.u32 4294901760, %v2023_v46  ;;  %v2512_v21 = vand.u32 4294901760, %v2041_v58  ;;  %v2513_v25 = vand.u32 4294901760, %v2045_v63  ;;  %v2526_v59 = vld [vmem:[#allocation15_spill] sm:$0xff] }
  0x94   : > { %v1563_v18 = vpack.c.bf16 %v2508_v34, %v2507_v24  ;;  %v1565_v36 = vpack.c.bf16 %v2510_v32, %v2509_v31  ;;  %v2514_v26 = vand.u32 4294901760, %v2057_v12  ;;  %1492 = vmatpush3.bf16.msra.mxu1 %v1491_v1  ;;  %1502 = vmatprep.subr.bf16.mxu0 %v1501_v41  ;;  %v2515_v28 = vand.u32 4294901760, %v2061_v17  ;;  %v2527_v34 = vld [vmem:[#allocation16_spill] sm:$0xff] }
  0x95   : > { %v1567_v35 = vpack.c.bf16 %v2512_v21, %v2511_v15  ;;  %v2516_v38 = vand.u32 4294901760, %v2072_v42  ;;  %v2517_v43 = vand.u32 4294901760, %v2076_v50  ;;  %v2518_v24 = vand.u32 4294901760, %v2085_v60  ;;  %1526 = vmatprep.subr.bf16.mxu1 %v1984_v14 }
  0x96   : > { %v1569_v52 = vpack.c.bf16 %v2514_v26, %v2513_v25  ;;  %v2519_v58 = vand.u32 4294901760, %v2091_v5  ;;  %v2520_v33 = vand.u32 4294901760, %v2102_v30  ;;  %v1507_v12 = vpack.c.bf16 %v2072_v42, %v2061_v17 }
  0x97   : > { %v1571_v40 = vpack.c.bf16 %v2516_v38, %v2515_v28  ;;  %v1573_v46 = vpack.c.bf16 %v2518_v24, %v2517_v43  ;;  %578 = vmatmul.mubr.f32.vlgmr.msra.gmra.mrb[0].mxu1 %v2198_v37  ;;  %1504 = vmatpush3.bf16.msra.mxu0 %v1503_v23  ;;  %v1509_v41 = vpack.c.bf16 %v2085_v60, %v2076_v50  ;;  %v2521_v1 = vand.u32 4294901760, %v2201_v57  ;;  %v2522_v57 = vld [vmem:[#allocation12_spill] sm:$0xff]  ;;  %v2523_v23 = vld [vmem:[#allocation13_spill] sm:$0xff] }
  0x98   : > { %v1575_v63 = vpack.c.bf16 %v2520_v33, %v2519_v58  ;;  %1528 = vmatpush3.bf16.msra.mxu1 %v1988_v20  ;;  %1506 = vmatprep.subr.bf16.mxu0 %v1505_v47  ;;  %v1511_v44 = vpack.c.bf16 %v2102_v30, %v2091_v5  ;;  %v1513_v17 = vpack.c.bf16 %v2115_v55, %v2106_v51  ;;  %v2524_v47 = vld [vmem:[#allocation17_spill] sm:$0xff] }
  0x99   : > { %1530 = vmatprep.subr.bf16.mxu1 %v1992_v22  ;;  %820 = vmatprep.mubr.f32.mxu1 %v2521_v1  ;;  %v1515_v42 = vpack.c.bf16 %v2132_v56, %v2121_v61  ;;  %v1517_v50 = vpack.c.bf16 %v2145_v2, %v2136_v10  ;;  %v1519_v60 = vpack.c.bf16 %v2162_v19, %v2151_v53 }
  0x9a   : > { %v1521_v5 = vpack.c.bf16 %v2176_v11, %v2166_v3  ;;  %v1523_v30 = vpack.c.bf16 %v2215_v54, %v2183_v8 }
  0x9b   : > { %1508 = vmatpush3.bf16.msra.mxu0 %v1507_v12 }
  0x9c   : > { %1532 = vmatpush3.bf16.msra.mxu1 %v1999_v27  ;;  %1510 = vmatprep.subr.bf16.mxu0 %v1509_v41 }
  0x9d   : > { %1534 = vmatprep.subr.bf16.mxu1 %v2013_v39 }
  0x9f   : > { %1512 = vmatpush3.bf16.msra.mxu0 %v1511_v44 }
  0xa0   : > { %1536 = vmatpush3.bf16.msra.mxu1 %v2021_v45  ;;  %1514 = vmatprep.subr.bf16.mxu0 %v1513_v17 }
  0xa1   : > { %1538 = vmatprep.subr.bf16.mxu1 %v2043_v62 }
  0xa3   : > { %1516 = vmatpush3.bf16.msra.mxu0 %v1515_v42 }
  0xa4   : > { %1540 = vmatpush3.bf16.msra.mxu1 %v2059_v16  ;;  %1518 = vmatprep.subr.bf16.mxu0 %v1517_v50 }
  0xa5   : > { %1542 = vmatprep.subr.bf16.mxu1 %v2074_v49 }
  0xa7   : > { %1520 = vmatpush3.bf16.msra.mxu0 %v1519_v60 }
  0xa8   : > { %1544 = vmatpush3.bf16.msra.mxu1 %v2089_v4  ;;  %1522 = vmatprep.subr.bf16.mxu0 %v1521_v5 }
  0xa9   : > { %1546 = vmatprep.subr.bf16.mxu1 %v2104_v48 }
  0xab   : > { %1524 = vmatpush3.bf16.msra.mxu0 %v1523_v30 }
  0xac   : > { %1548 = vmatpush3.bf16.msra.mxu1 %v2522_v57  ;;  %1558 = vmatprep.subr.bf16.mxu0 %v1557_v9  ;;  %v2529_v9 = vand.u32 4294901760, %v2115_v55 }
  0xad   : > { %1550 = vmatprep.subr.bf16.mxu1 %v2523_v23 }
  0xae   : > { %716 = vmatmul.mubr.f32.vlgmr.msra.gmra.mrb[2].mxu0 %v2211_v0  ;;  %v2530_v0 = vand.u32 4294901760, %v2121_v61  ;;  %v2536_v61 = vand.u32 4294901760, %v2166_v3 }
  0xaf   : > { %1560 = vmatpush3.bf16.msra.mxu0 %v1559_v13  ;;  %990 = vmatprep.mubr.f32.mxu0 %v2524_v47 }
  0xb0   : > { %1552 = vmatpush3.bf16.msra.mxu1 %v2525_v29  ;;  %1562 = vmatprep.subr.bf16.mxu0 %v1561_v7  ;;  %v2528_v7 = vand.u32 4294901760, %v2106_v51  ;;  %v2534_v51 = vand.u32 4294901760, %v2151_v53 }
  0xb1   : > { %1554 = vmatprep.subr.bf16.mxu1 %v2526_v59 }
  0xb3   : > { %1564 = vmatpush3.bf16.msra.mxu0 %v1563_v18 }
  0xb4   : > { %1556 = vmatpush3.bf16.msra.mxu1 %v2527_v34  ;;  %1566 = vmatprep.subr.bf16.mxu0 %v1565_v36 }
  0xb5   : > { %1590 = vmatprep.subr.bf16.mxu1 %v1984_v14  ;;  %v1577_v14 = vpack.c.bf16 %v2529_v9, %v2528_v7 }
  0xb7   : > { %824 = vmatmul.mubr.f32.vlgmr.msra.gmra.mrb[2].mxu1 %v343_v6  ;;  %1568 = vmatpush3.bf16.msra.mxu0 %v1567_v35 }
  0xb8   : > { %1592 = vmatpush3.bf16.msra.mxu1 %v1988_v20  ;;  %1570 = vmatprep.subr.bf16.mxu0 %v1569_v52  ;;  %v2531_v20 = vand.u32 4294901760, %v2132_v56 }
  0xb9   : > { %1594 = vmatprep.subr.bf16.mxu1 %v1992_v22  ;;  %1094 = vmatprep.mubr.f32.mxu1 %v2524_v47  ;;  %v2532_v22 = vand.u32 4294901760, %v2136_v10  ;;  %v2538_v10 = vand.u32 4294901760, %v2183_v8 }
  0xba   : > { %v1579_v6 = vpack.c.bf16 %v2531_v20, %v2530_v0 }
  0xbb   : > { %1572 = vmatpush3.bf16.msra.mxu0 %v1571_v40 }
  0xbc   : > { %1596 = vmatpush3.bf16.msra.mxu1 %v1999_v27  ;;  %1574 = vmatprep.subr.bf16.mxu0 %v1573_v46  ;;  %v2533_v27 = vand.u32 4294901760, %v2145_v2 }
  0xbd   : > { %1598 = vmatprep.subr.bf16.mxu1 %v2013_v39  ;;  %v2535_v39 = vand.u32 4294901760, %v2162_v19 }
  0xbe   : > { %v1581_v13 = vpack.c.bf16 %v2533_v27, %v2532_v22 }
  0xbf   : > { %1576 = vmatpush3.bf16.msra.mxu0 %v1575_v63  ;;  %v1583_v55 = vpack.c.bf16 %v2535_v39, %v2534_v51 }
  0xc0   : > { %1600 = vmatpush3.bf16.msra.mxu1 %v2021_v45  ;;  %1578 = vmatprep.subr.bf16.mxu0 %v1577_v14  ;;  %v2537_v45 = vand.u32 4294901760, %v2176_v11 }
  0xc1   : > { %1602 = vmatprep.subr.bf16.mxu1 %v2043_v62  ;;  %v2539_v62 = vand.u32 4294901760, %v2215_v54 }
  0xc2   : > { %v1585_v56 = vpack.c.bf16 %v2537_v45, %v2536_v61 }
  0xc3   : > { %1580 = vmatpush3.bf16.msra.mxu0 %v1579_v6  ;;  %v1587_v2 = vpack.c.bf16 %v2539_v62, %v2538_v10 }
  0xc4   : > { %1604 = vmatpush3.bf16.msra.mxu1 %v2059_v16  ;;  %1582 = vmatprep.subr.bf16.mxu0 %v1581_v13 }
  0xc5   : > { %1606 = vmatprep.subr.bf16.mxu1 %v2074_v49 }
  0xc7   : > { %1584 = vmatpush3.bf16.msra.mxu0 %v1583_v55 }
  0xc8   : > { %1608 = vmatpush3.bf16.msra.mxu1 %v2089_v4  ;;  %1586 = vmatprep.subr.bf16.mxu0 %v1585_v56  ;;  %v238_v4 = vstv %s237_s19 }
  0xc9   : > { %1610 = vmatprep.subr.bf16.mxu1 %v2104_v48 }
  0xcb   : > { %1588 = vmatpush3.bf16.msra.mxu0 %v1587_v2 }
  0xcc   : > { %1612 = vmatpush3.bf16.msra.mxu1 %v2522_v57 }
  0xcd   : > { %1614 = vmatprep.subr.bf16.mxu1 %v2523_v23 }
  0xce   : > { %992 = vmatmul.mubr.f32.vlgmr.msra.gmra.mrb[4].mxu0 %v2198_v37 }
  0xd0   : > { %1616 = vmatpush3.bf16.msra.mxu1 %v2525_v29 }
  0xd1   : > { %1618 = vmatprep.subr.bf16.mxu1 %v2526_v59 }
  0xd4   : > { %1620 = vmatpush3.bf16.msra.mxu1 %v2527_v34 }
  0xd7   : > { %1096 = vmatmul.mubr.f32.vlgmr.msra.gmra.mrb[4].mxu1 %v2198_v37 }
 0x161   : > { %v1251_v53 = vpop.f32.mrb[0].mxu0 }
 0x162   : > { %v1252_v16 = vpop.f32.mrb[1].mxu0 }
 0x163   : > { %v1253_v49 = vadd.f32 %v1252_v16, %v1251_v53 }
 0x165   : > { %v348_v48 = vadd.f32 %v1253_v49, %v238_v4 }
 0x16a   : > { %v1286_v3 = vpop.f32.mrb[0].mxu1 }
 0x16b   : > { %v1287_v8 = vpop.f32.mrb[1].mxu1 }
 0x16c   : > { %v1288_v19 = vadd.f32 %v1287_v8, %v1286_v3 }
 0x16e   : > { %v580_v11 = vadd.f32 %v1288_v19, %v348_v48 }
 0x181   : > { %v1321_v54 = vpop.f32.mrb[2].mxu0 }
 0x182   : > { %v1322_v18 = vpop.f32.mrb[3].mxu0 }
 0x183   : > { %v1323_v31 = vadd.f32 %v1322_v18, %v1321_v54 }
 0x185   : > { %v718_v32 = vadd.f32 %v1323_v31, %v580_v11 }
 0x18a   : > { %v1356_v36 = vpop.f32.mrb[2].mxu1 }
 0x18b   : > { %v1357_v15 = vpop.f32.mrb[3].mxu1 }
 0x18c   : > { %v1358_v21 = vadd.f32 %v1357_v15, %v1356_v36 }
 0x18e   : > { %v826_v37 = vadd.f32 %v1358_v21, %v718_v32 }
 0x1a1   : > { %v1391_v35 = vpop.f32.mrb[4].mxu0 }
 0x1a2   : > { %v1392_v25 = vpop.f32.mrb[5].mxu0 }
 0x1a3   : > { %v1393_v26 = vadd.f32 %v1392_v25, %v1391_v35 }
 0x1a5   : > { %v994_v52 = vadd.f32 %v1393_v26, %v826_v37 }
 0x1aa   : > { %v1426_v28 = vpop.f32.mrb[4].mxu1 }
 0x1ab   : > { %v1427_v38 = vpop.f32.mrb[5].mxu1 }
 0x1ac   : > { %v1428_v40 = vadd.f32 %v1427_v38, %v1426_v28 }
 0x1ae   : > { %v1098_v43 = vadd.f32 %v1428_v40, %v994_v52 }
 0x1b0   : > { %v1213_v24 = vmul.f32 -1.442695, %v1098_v43 }
 0x1b2   : > { %1680 = vpow2.f32 %v1213_v24 }
 0x1bc   : > { %v1681_v46 = vpop.eup %1680 }
 0x1bd   : > { %v1104_v58 = vadd.f32 1.0, %v1681_v46 }
 0x1bf   : > { %1682 = vrcp.f32 %v1104_v58 }
 0x1c9   : > { %v1683_v33 = vpop.eup %1682 }
 0x1ca   : > { %1107 = vst [vmem:[%s202_s26] sm:$0xff] %v1683_v33 }
 0x1cb   : > { %1755 = shalt.err (!%p1752_p7)
}
 0x1cc   : > { %s1756_s22 = scalar_lea.hbm %s2389_s8, 128  ;;  %s1760_s24 = scalar_lea.hbm %s2435_s3, 512 }
 0x1cd   : > { %p1757_p9 = scmp.ne.s32.totalorder %s2389_s8, %s1756_s22  ;;  %p1761_p0 = scmp.lt.u32.totalorder %s2389_s8, %s2435_s3 }
 0x1ce   : > { %p1762_p10 = scmp.lt.u32.totalorder %s1760_s24, %s1756_s22  ;;  %p1764_p1 = scmp.lt.u32.totalorder %s1756_s22, %s2389_s8 }
 0x1cf   : > { %p1758_p11 = pnand %p1757_p9, %p1925_p12 }
 0x1d0   : > { %p1763_p2 = por %p1762_p10, %p1761_p0 }
 0x1d1   : > { %p1759_p5 = pneg %p1758_p11 }
 0x1d2   : > { %p1765_p4 = por %p1764_p1, %p1763_p2 }
 0x1d4   : > { %p1766_p6 = pnand %p1765_p4, %p1759_p5 }
 0x1d6   : > { %1769 = shalt.err (!%p1766_p6)
}
 0x1d7   : > { %1627 = dma.vmem_to_hbm [thread:$0]  (%p1925_p12), %s2391_s27, 128, %s2389_s8, %s1109_s9  }
 0x1d8 PF: > { %p1644_p8 = scmp.ge.s32.totalorder %s1812_s17, 2  ;;  %s1134_s6 = sand.u32 1, %s1800_s14  }
 0x1d9   : > { %p2540_p13 = scmp.ne.s32.totalorder %s2485_s20, 0  ;;  %s1135_s19 = scalar_lea.sflag [#allocation5], %s1134_s6 }
 0x1db   : > { %p1638_p3 = pnand %p1644_p8, %p2540_p13 }
 0x1dd   : > { %1795 = dma.done.wait (!%p1638_p3), %s1135_s19, 128  }
 0x1de   : > { %1797 = vsyncadd (!%p1638_p3), %s1135_s19, 4294967168  ;;  %p18_p7 = scmp.ge.s32.totalorder %s1895_s25, 6   ;;  %s2541_s14 = smov %s1804_s15 }
 0x1df   : > { %s2542_s15 = smov %s1808_s16  ;;  %s2543_s16 = smov %s1921_s13 }
 0x1e0   : > { %s2544_s17 = smov %s1895_s25  ;;  %20 = sbr.rel (!%p18_p7) target bundleno = 8 (0x8), region = 81 }
 0x1e7   :  { %1140 = vsyncpa [#allocation4], 1 }
 0x1e8   :  { %1142 = vsyncpa [#allocation4 + $0x1], 1 }
 0x1e9   :  { %1143 = vsyncpa [#allocation7], 1 }
 0x1ea   :  { %1144 = vsyncpa [#allocation5], 1 }
 0x1eb   :  { %1146 = vsyncpa [#allocation5 + $0x1], 1 }

</bundles_post_ra>
